<compile_context>
chip_gen: v7x
topology: tpu7x:2x2x1
jax: 0.10.0
libtpu: 0.0.40
codegen_flags: <defaults>
</compile_context>

<pallas_src>
import numpy as np
import jax
import jax.numpy as jnp
from jax.experimental import pallas as pl
from jax.experimental.pallas import tpu as pltpu

_LANES = 128


def _make_filter(sigma):
    """Replicates torch: f = exp2(-(arange(-size, size+1)/sigma)^2); f /= f.sum()."""
    size = int(sigma * 3)
    t = np.arange(-size, size + 1).astype(np.float32)
    f = np.exp2(-np.square(t / np.float32(sigma)))
    f = f / f.sum()
    return f.astype(np.float32)  # shape (2*size+1,), symmetric


def _round_up(v, m):
    return ((v + m - 1) // m) * m


def _vmem_budget_bytes():
    """(capacity, usable budget) for the current TPU generation."""
    try:
        cap = int(pltpu.get_tpu_info().vmem_capacity_bytes)
    except Exception:
        cap = 64 << 20                 # v7x (smallest VMEM) as conservative fallback
    return cap, cap - (16 << 20)       # leave ~16 MiB headroom for the compiler


def _block_footprint(tp, h, w, wp, pad, in_item, out_item):
    """VMEM bytes for one grid step: double-buffered in/out blocks, the two
    scratches, plus a conservative allowance for compiler temporaries of the
    roll / tap-pair expressions."""
    blk_in = tp * h * w * in_item
    blk_out = tp * h * w * out_item
    xpad = tp * h * wp * 4
    hacc = tp * (h + 2 * pad) * w * 4
    return 2 * blk_in + 2 * blk_out + 4 * xpad + 3 * hacc


def _pick_plane_tile(p, h, w, wp, pad, in_item, out_item, budget):
    """Largest divisor of P whose block fits the VMEM budget; prefer >= 2 grid
    steps (megacore / pipelining) whenever P >= 2."""
    divisors = sorted((d for d in range(1, p + 1) if p % d == 0), reverse=True)
    fitting = [d for d in divisors
               if _block_footprint(d, h, w, wp, pad, in_item, out_item) <= budget]
    if not fitting:
        # TODO(synk): H-tile with a row halo; fall back to one plane per step.
        return 1
    if p >= 2:
        proper = [d for d in fitting if d < p]
        if proper:
            return proper[0]
    return fitting[0]


def _build_kernel(taps, h, w, wp, pad, tp):
    ksize = len(taps)
    assert ksize == 2 * pad + 1 and pad >= 1
    assert wp >= w + pad

    def kernel(x_ref, o_ref, xpad_ref, hacc_ref):
        # ---- stage input into the lane-padded f32 scratch.  The zero columns
        # [w, wp) make the circular rolls below equivalent to zero-padded
        # shifts (both rolls of a symmetric pair only wrap zeros in).
        xpad_ref[:, :, 0:w] = x_ref[...].astype(jnp.float32)
        xpad_ref[:, :, w:wp] = jnp.zeros((tp, h, wp - w), jnp.float32)

        # ---- horizontal pass (W = lane axis): symmetric tap pairs via XLU
        # rolls; pairing makes the result independent of the roll direction
        # convention and halves the multiplies.
        xp = xpad_ref[...]
        acc = taps[pad] * xp
        for d in range(1, pad + 1):
            pair = (pltpu.roll(xp, shift=d, axis=2)
                    + pltpu.roll(xp, shift=wp - d, axis=2))
            acc = acc + taps[pad + d] * pair

        # ---- zero-halo the intermediate every step (safe under "parallel"
        # megacore sharding), store the body rows.
        hacc_ref[:, 0:pad, :] = jnp.zeros((tp, pad, w), jnp.float32)
        hacc_ref[:, pad + h:h + 2 * pad, :] = jnp.zeros((tp, pad, w), jnp.float32)
        body = acc[:, :, 0:w]
        hacc_ref[:, pad:pad + h, :] = body

        # ---- vertical pass (H = sublane axis): pure sublane-offset slices,
        # symmetric tap pairs, zero halo already present in the scratch.
        out = taps[pad] * body
        for d in range(1, pad + 1):
            pair = (hacc_ref[:, pad + d:pad + d + h, :]
                    + hacc_ref[:, pad - d:pad - d + h, :])
            out = out + taps[pad + d] * pair
        o_ref[...] = out.astype(o_ref.dtype)

    return kernel


def _blur_planes_pallas(xr, filt, out_dtype):
    """xr: (P, H, W) planes (NCHW-native view). Returns blurred (P, H, W)."""
    p, h, w = xr.shape
    ksize = int(filt.shape[0])
    pad = ksize // 2
    taps = [float(v) for v in filt]                 # static -> baked into kernel
    wp = _round_up(w + pad, _LANES)                 # lane-padded scratch width

    in_item = jnp.dtype(xr.dtype).itemsize
    out_item = jnp.dtype(out_dtype).itemsize
    cap, budget = _vmem_budget_bytes()
    tp = _pick_plane_tile(p, h, w, wp, pad, in_item, out_item, budget)
    grid = (p // tp,)

    footprint = _block_footprint(tp, h, w, wp, pad, in_item, out_item)
    vmem_limit = int(min(max(footprint + (8 << 20), 32 << 20), cap - (4 << 20)))

    kernel = _build_kernel(taps, h, w, wp, pad, tp)

    return pl.pallas_call(
        kernel,
        out_shape=jax.ShapeDtypeStruct((p, h, w), out_dtype),
        grid_spec=pltpu.PrefetchScalarGridSpec(
            num_scalar_prefetch=0,
            grid=grid,
            in_specs=[pl.BlockSpec((tp, h, w), lambda i: (i, 0, 0))],
            out_specs=pl.BlockSpec((tp, h, w), lambda i: (i, 0, 0)),
            scratch_shapes=[
                pltpu.VMEM((tp, h, wp), jnp.float32),           # lane-padded input
                pltpu.VMEM((tp, h + 2 * pad, w), jnp.float32),  # horizontal result
            ],
        ),
        compiler_params=pltpu.CompilerParams(
            dimension_semantics=("parallel",),
            vmem_limit_bytes=vmem_limit,
        ),
    )(xr)


def gaussian_blur(x, sigma):
    """JAX/Pallas equivalent of kappamodules gaussian_blur(x, sigma)."""
    if x.ndim == 2:
        mode = "hw"
        x = x[None, None]
    elif x.ndim == 3:
        assert x.shape[0] == 1
        mode = "1hw"
        x = x[None]
    else:
        mode = None
    n, c, h, w = x.shape

    filt = _make_filter(sigma)
    if int(filt.shape[0]) // 2 == 0:
        out = x                                            # single-tap filter == identity
    else:
        xr = x.reshape(n * c, h, w)                        # free view: no HBM relayout
        out = _blur_planes_pallas(xr, filt, x.dtype).reshape(n, c, h, w)

    if mode == "hw":
        out = out[0, 0]
    elif mode == "1hw":
        out = out[0]
    return out


class GaussianBlur:
    def __init__(self, sigma):
        self.sigma = sigma

    def __call__(self, x):
        return gaussian_blur(x, self.sigma)


def _reference_blur(x, sigma):
    """Pure-JAX separable blur (zero padding, same filter) for correctness."""
    filt = jnp.asarray(_make_filter(sigma))
    k = int(filt.shape[0])
    pad = k // 2
    # horizontal
    xp = jnp.pad(x, ((0, 0), (0, 0), (0, 0), (pad, pad)))
    yh = sum(filt[i] * xp[..., i:i + x.shape[-1]] for i in range(k))
    # vertical
    yp = jnp.pad(yh, ((0, 0), (0, 0), (pad, pad), (0, 0)))
    yv = sum(filt[i] * yp[..., i:i + x.shape[-2], :] for i in range(k))
    return yv


if __name__ == "__main__":
    key = jax.random.PRNGKey(0)
    x = jax.random.normal(key, (2, 4, 16, 16), dtype=jnp.float32)  # NCHW
    sigma = 1.0

    module = GaussianBlur(sigma)
    out = jax.block_until_ready(module(x))
    ref = jax.block_until_ready(_reference_blur(x, sigma))
    assert out.shape == x.shape and out.dtype == x.dtype
    np.testing.assert_allclose(np.asarray(out), np.asarray(ref),
                               rtol=1e-5, atol=1e-5)

    # Second config: non-square spatial dims, prime plane count, larger sigma.
    x2 = jax.random.normal(jax.random.PRNGKey(1), (1, 3, 20, 24), dtype=jnp.float32)
    out2 = jax.block_until_ready(gaussian_blur(x2, 1.5))
    ref2 = jax.block_until_ready(_reference_blur(x2, 1.5))
    np.testing.assert_allclose(np.asarray(out2), np.asarray(ref2),
                               rtol=1e-5, atol=1e-5)

    print("KERNEL_OK")
</pallas_src>

<mosaic_0001>
module attributes {stable_mosaic.version = 11 : i64} {
  func.func @kernel(%arg0: i32, %arg1: memref<4x16x16xf32, #tpu.memory_space<vmem>>, %arg2: memref<4x16x16xf32, #tpu.memory_space<vmem>>, %arg3: memref<4x16x128xf32, #tpu.memory_space<vmem>>, %arg4: memref<4x22x16xf32, #tpu.memory_space<vmem>>) attributes {dimension_semantics = [#tpu.dimension_semantics<parallel>], iteration_bounds = array<i64: 2>, scalar_prefetch = 0 : i64, scratch_operands = 2 : i64, tpu.core_type = #tpu.core_type<tc>, window_params = [{transform_indices = @transform_0, window_bounds = array<i64: 4, 16, 16>}, {transform_indices = @transform_1, window_bounds = array<i64: 4, 16, 16>}]} {
    %c0 = arith.constant 0 : index
    %c0_0 = arith.constant 0 : index
    %c0_1 = arith.constant 0 : index
    %0 = vector.load %arg1[%c0, %c0_0, %c0_1] : memref<4x16x16xf32, #tpu.memory_space<vmem>>, vector<4x16x16xf32>
    %c0_2 = arith.constant 0 : index
    %c0_3 = arith.constant 0 : index
    %c0_4 = arith.constant 0 : index
    %1 = vector.load %arg3[%c0_2, %c0_3, %c0_4] : memref<4x16x128xf32, #tpu.memory_space<vmem>>, vector<4x16x16xf32>
    tpu.vector_store %arg3[%c0_2, %c0_3, %c0_4], %0 {strides = array<i32>} : memref<4x16x128xf32, #tpu.memory_space<vmem>>, vector<4x16x16xf32>,
    %cst = arith.constant 0.000000e+00 : f32
    %2 = vector.broadcast %cst : f32 to vector<4x16x112xf32>
    %c0_5 = arith.constant 0 : index
    %c0_6 = arith.constant 0 : index
    %c16 = arith.constant 16 : index
    %3 = vector.load %arg3[%c0_5, %c0_6, %c16] : memref<4x16x128xf32, #tpu.memory_space<vmem>>, vector<4x16x112xf32>
    tpu.vector_store %arg3[%c0_5, %c0_6, %c16], %2 {strides = array<i32>} : memref<4x16x128xf32, #tpu.memory_space<vmem>>, vector<4x16x112xf32>,
    %c0_7 = arith.constant 0 : index
    %c0_8 = arith.constant 0 : index
    %c0_9 = arith.constant 0 : index
    %4 = vector.load %arg3[%c0_7, %c0_8, %c0_9] : memref<4x16x128xf32, #tpu.memory_space<vmem>>, vector<4x16x128xf32>
    %cst_10 = arith.constant 0.469724774 : f32
    %5 = vector.broadcast %cst_10 : f32 to vector<4x16x128xf32>
    %6 = arith.mulf %5, %4 : vector<4x16x128xf32>
    %c1_i32 = arith.constant 1 : i32
    %7 = tpu.dynamic_rotate %4 by %c1_i32 dim 2 : vector<4x16x128xf32>, i32 -> vector<4x16x128xf32>
    %c127_i32 = arith.constant 127 : i32
    %8 = tpu.dynamic_rotate %4 by %c127_i32 dim 2 : vector<4x16x128xf32>, i32 -> vector<4x16x128xf32>
    %9 = arith.addf %7, %8 : vector<4x16x128xf32>
    %cst_11 = arith.constant 0.234862387 : f32
    %10 = vector.broadcast %cst_11 : f32 to vector<4x16x128xf32>
    %11 = arith.mulf %10, %9 : vector<4x16x128xf32>
    %12 = arith.addf %6, %11 : vector<4x16x128xf32>
    %c2_i32 = arith.constant 2 : i32
    %13 = tpu.dynamic_rotate %4 by %c2_i32 dim 2 : vector<4x16x128xf32>, i32 -> vector<4x16x128xf32>
    %c126_i32 = arith.constant 126 : i32
    %14 = tpu.dynamic_rotate %4 by %c126_i32 dim 2 : vector<4x16x128xf32>, i32 -> vector<4x16x128xf32>
    %15 = arith.addf %13, %14 : vector<4x16x128xf32>
    %cst_12 = arith.constant 0.0293577984 : f32
    %16 = vector.broadcast %cst_12 : f32 to vector<4x16x128xf32>
    %17 = arith.mulf %16, %15 : vector<4x16x128xf32>
    %18 = arith.addf %12, %17 : vector<4x16x128xf32>
    %c3_i32 = arith.constant 3 : i32
    %19 = tpu.dynamic_rotate %4 by %c3_i32 dim 2 : vector<4x16x128xf32>, i32 -> vector<4x16x128xf32>
    %c125_i32 = arith.constant 125 : i32
    %20 = tpu.dynamic_rotate %4 by %c125_i32 dim 2 : vector<4x16x128xf32>, i32 -> vector<4x16x128xf32>
    %21 = arith.addf %19, %20 : vector<4x16x128xf32>
    %cst_13 = arith.constant 9.17431199E-4 : f32
    %22 = vector.broadcast %cst_13 : f32 to vector<4x16x128xf32>
    %23 = arith.mulf %22, %21 : vector<4x16x128xf32>
    %24 = arith.addf %18, %23 : vector<4x16x128xf32>
    %cst_14 = arith.constant 0.000000e+00 : f32
    %25 = vector.broadcast %cst_14 : f32 to vector<4x3x16xf32>
    %c0_15 = arith.constant 0 : index
    %c0_16 = arith.constant 0 : index
    %c0_17 = arith.constant 0 : index
    %26 = vector.load %arg4[%c0_15, %c0_16, %c0_17] : memref<4x22x16xf32, #tpu.memory_space<vmem>>, vector<4x3x16xf32>
    tpu.vector_store %arg4[%c0_15, %c0_16, %c0_17], %25 {strides = array<i32>} : memref<4x22x16xf32, #tpu.memory_space<vmem>>, vector<4x3x16xf32>,
    %cst_18 = arith.constant 0.000000e+00 : f32
    %27 = vector.broadcast %cst_18 : f32 to vector<4x3x16xf32>
    %c0_19 = arith.constant 0 : index
    %c19 = arith.constant 19 : index
    %c0_20 = arith.constant 0 : index
    %28 = vector.load %arg4[%c0_19, %c19, %c0_20] : memref<4x22x16xf32, #tpu.memory_space<vmem>>, vector<4x3x16xf32>
    tpu.vector_store %arg4[%c0_19, %c19, %c0_20], %27 {strides = array<i32>} : memref<4x22x16xf32, #tpu.memory_space<vmem>>, vector<4x3x16xf32>,
    %29 = vector.extract_strided_slice %24 {offsets = [0, 0, 0], sizes = [4, 16, 16], strides = [1, 1, 1]} : vector<4x16x128xf32> to vector<4x16x16xf32>
    %c0_21 = arith.constant 0 : index
    %c3 = arith.constant 3 : index
    %c0_22 = arith.constant 0 : index
    %30 = vector.load %arg4[%c0_21, %c3, %c0_22] : memref<4x22x16xf32, #tpu.memory_space<vmem>>, vector<4x16x16xf32>
    tpu.vector_store %arg4[%c0_21, %c3, %c0_22], %29 {strides = array<i32>} : memref<4x22x16xf32, #tpu.memory_space<vmem>>, vector<4x16x16xf32>,
    %cst_23 = arith.constant 0.469724774 : f32
    %31 = vector.broadcast %cst_23 : f32 to vector<4x16x16xf32>
    %32 = arith.mulf %31, %29 : vector<4x16x16xf32>
    %c0_24 = arith.constant 0 : index
    %c4 = arith.constant 4 : index
    %c0_25 = arith.constant 0 : index
    %33 = vector.load %arg4[%c0_24, %c4, %c0_25] : memref<4x22x16xf32, #tpu.memory_space<vmem>>, vector<4x16x16xf32>
    %c0_26 = arith.constant 0 : index
    %c2 = arith.constant 2 : index
    %c0_27 = arith.constant 0 : index
    %34 = vector.load %arg4[%c0_26, %c2, %c0_27] : memref<4x22x16xf32, #tpu.memory_space<vmem>>, vector<4x16x16xf32>
    %35 = arith.addf %33, %34 : vector<4x16x16xf32>
    %cst_28 = arith.constant 0.234862387 : f32
    %36 = vector.broadcast %cst_28 : f32 to vector<4x16x16xf32>
    %37 = arith.mulf %36, %35 : vector<4x16x16xf32>
    %38 = arith.addf %32, %37 : vector<4x16x16xf32>
    %c0_29 = arith.constant 0 : index
    %c5 = arith.constant 5 : index
    %c0_30 = arith.constant 0 : index
    %39 = vector.load %arg4[%c0_29, %c5, %c0_30] : memref<4x22x16xf32, #tpu.memory_space<vmem>>, vector<4x16x16xf32>
    %c0_31 = arith.constant 0 : index
    %c1 = arith.constant 1 : index
    %c0_32 = arith.constant 0 : index
    %40 = vector.load %arg4[%c0_31, %c1, %c0_32] : memref<4x22x16xf32, #tpu.memory_space<vmem>>, vector<4x16x16xf32>
    %41 = arith.addf %39, %40 : vector<4x16x16xf32>
    %cst_33 = arith.constant 0.0293577984 : f32
    %42 = vector.broadcast %cst_33 : f32 to vector<4x16x16xf32>
    %43 = arith.mulf %42, %41 : vector<4x16x16xf32>
    %44 = arith.addf %38, %43 : vector<4x16x16xf32>
    %c0_34 = arith.constant 0 : index
    %c6 = arith.constant 6 : index
    %c0_35 = arith.constant 0 : index
    %45 = vector.load %arg4[%c0_34, %c6, %c0_35] : memref<4x22x16xf32, #tpu.memory_space<vmem>>, vector<4x16x16xf32>
    %c0_36 = arith.constant 0 : index
    %c0_37 = arith.constant 0 : index
    %c0_38 = arith.constant 0 : index
    %46 = vector.load %arg4[%c0_36, %c0_37, %c0_38] : memref<4x22x16xf32, #tpu.memory_space<vmem>>, vector<4x16x16xf32>
    %47 = arith.addf %45, %46 : vector<4x16x16xf32>
    %cst_39 = arith.constant 9.17431199E-4 : f32
    %48 = vector.broadcast %cst_39 : f32 to vector<4x16x16xf32>
    %49 = arith.mulf %48, %47 : vector<4x16x16xf32>
    %50 = arith.addf %44, %49 : vector<4x16x16xf32>
    %c0_40 = arith.constant 0 : index
    %c0_41 = arith.constant 0 : index
    %c0_42 = arith.constant 0 : index
    %51 = vector.load %arg2[%c0_40, %c0_41, %c0_42] : memref<4x16x16xf32, #tpu.memory_space<vmem>>, vector<4x16x16xf32>
    tpu.vector_store %arg2[%c0_40, %c0_41, %c0_42], %50 {strides = array<i32>} : memref<4x16x16xf32, #tpu.memory_space<vmem>>, vector<4x16x16xf32>,
    return
  }
  func.func @transform_0(%arg0: i32) -> (i32, i32, i32) {
    %c0_i32 = arith.constant 0 : i32
    %c0_i32_0 = arith.constant 0 : i32
    %c0_i32_1 = arith.constant 0 : i32
    return %arg0, %c0_i32, %c0_i32_0 : i32, i32, i32
  }
  func.func @transform_1(%arg0: i32) -> (i32, i32, i32) {
    %c0_i32 = arith.constant 0 : i32
    %c0_i32_0 = arith.constant 0 : i32
    %c0_i32_1 = arith.constant 0 : i32
    return %arg0, %c0_i32, %c0_i32_0 : i32, i32, i32
  }
}

</mosaic_0001>

<bundles_post_ra>
// kernel: tpu_custom_call.1
= control target key start
LH: loop header
LB: loop body
LE: loop exit
PB: predicated region body
PF: predicated region fallthrough
CT: control target
= control target key end

     0   :  { %6 = vsyncpa [#allocation5], 0  ;;  %s1142_s0 = inlined_call_operand.hbm [shape: f32[8,16,16], index: 0, kind: input, shape index: {}]   ;;  %s1143_s1 = inlined_call_operand.hbm [shape: f32[8,16,16], index: 1, kind: output, shape index: {}]  }
   0x1   :  { %8 = vsyncpa [#allocation5 + $0x1], 0 }
   0x2   :  { %9 = vsyncpa [#allocation6], 0 }
   0x3   :  { %11 = vsyncpa [#allocation6 + $0x1], 0  ;;  %s787_s6 = smov 0   ;;  %s789_s7 = smov 0  }
   0x4   :  { %s791_s8 = smov 0   ;;  %s793_s9 = smov 0  }
   0x5 LB: > { %s808_s10 = sadd.s32 4294967295, %s762_s9   ;;  %s589_s11 = sadd.s32 4294967294, %s762_s9   ;;  %s762_s9 = sphi %s793_s9, %s1156_s9   ;;  %s758_s8 = sphi %s791_s8, %s1155_s8   ;;  %s754_s7 = sphi %s789_s7, %s1154_s7   ;;  %s750_s6 = sphi %s787_s6, %s1153_s6  }
   0x6   : > { %s812_s12 = sadd.s32 1, %s762_s9   ;;  %s24_s13 = sadd.s32 1, %s758_s8 }
   0x7   : > { %s21_s14 = ssub.s32 %s762_s9, %s812_s12  ;;  %p31_p0 = scmp.ne.s32.totalorder %s758_s8, %s754_s7 }
   0x8   : > { %p22_p1 = scmp.eq.s32.totalorder %s21_s14, 0  ;;  %p32_p2 = scmp.eq.s32.totalorder %s762_s9, 0 }
   0x9   : > { %p37_p3 = scmp.ne.s32.totalorder %s754_s7, %s750_s6  ;;  %p38_p4 = scmp.eq.s32.totalorder %s808_s10, 0 }
   0xa   : > { %s824_s15 = scalar_select %p22_p1, %s758_s8, %s24_s13  }
   0xb   : > { %p826_p5 = por %p32_p2, %p31_p0  ;;  %p830_p6 = por %p38_p4, %p37_p3 }
   0xc   : > { %p61_p7 = scmp.eq.s32.totalorder %s808_s10, 1  ;;  %p67_p8 = scmp.eq.s32.totalorder %s589_s11, 1 }
   0xd   : > { %p621_p10 = scmp.lt.s32.totalorder %s762_s9, 2  ;;  %s87_s20 = sand.u32 1, %s758_s8  }
   0xe   : > { %p837_p11 = por %p61_p7, %p31_p0  ;;  %p841_p12 = por %p67_p8, %p37_p3 }
   0xf   : > { %s606_s21 = sshll.u32 %s762_s9, 10  ;;  %s592_s22 = sshll.u32 %s87_s20, 6 }
  0x10   : > { %s1147_s18 = scalar_select %p837_p11, 1, 0 }
  0x11   : > { %s1148_s19 = scalar_select %p841_p12, 1, 0 }
  0x12   : > { %s850_s25 = scalar_lea.hbm %s1142_s0, %s606_s21  ;;  %s91_s26 = scalar_lea.vmem [#allocation4], %s592_s22 }
  0x13   : > { %s99_s27 = sshll.u32 %s91_s26, 4  ;;  %p854_p13 = pnand %p621_p10, %p826_p5  ;;  %s858_s27 = int_to_ptr.vmem [resolvable:$true] %s99_s27 }
  0x14   : > { %s860_s29 = scalar_lea.sflag [#allocation5], %s87_s20  ;;  %s666_s30 = scalar_lea.hbm %s850_s25, 1024 }
  0x15   : > { %p667_p0 = scmp.ne.s32.totalorder %s850_s25, %s666_s30  ;;  %p668_p1 = pneg %p854_p13 }
  0x16   : > { %s671_s4 = scalar_lea.hbm %s1142_s0, 2048  ;;  %p672_p4 = scmp.lt.u32.totalorder %s850_s25, %s1142_s0 }
  0x17   : > { %p669_p2 = pnand %p668_p1, %p667_p0  ;;  %p673_p5 = scmp.lt.u32.totalorder %s671_s4, %s666_s30 }
  0x18   : > { %p675_p8 = scmp.lt.u32.totalorder %s666_s30, %s850_s25 }
  0x19   : > { %p670_p3 = pneg %p669_p2  ;;  %p674_p7 = por %p673_p5, %p672_p4 }
  0x1b   : > { %p676_p10 = por %p675_p8, %p674_p7 }
  0x1d   : > { %p677_p9 = pnand %p676_p10, %p670_p3 }
  0x1f   : > { %680 = shalt.err (!%p677_p9)
}
  0x20   : > { %s681_s13 = scalar_lea.vmem %s858_s27, 1024  ;;  %s764_s14 = smov [#allocation4]  }
  0x21   : > { %p682_p0 = scmp.ne.s32.totalorder %s858_s27, %s681_s13  ;;  %s686_s16 = sshll.u32 %s764_s14, 4  ;;  %s687_s16 = int_to_ptr.vmem [resolvable:$false] %s686_s16 }
  0x22   : > { %s688_s20 = scalar_lea.vmem %s687_s16, 2048  ;;  %p689_p11 = scmp.lt.s32.totalorder %s858_s27, %s687_s16 }
  0x23   : > { %p684_p2 = pnand %p682_p0, %p668_p1  ;;  %p690_p4 = scmp.lt.s32.totalorder %s688_s20, %s681_s13 }
  0x25   : > { %p685_p12 = pneg %p684_p2  ;;  %p691_p5 = por %p690_p4, %p689_p11 }
  0x27   : > { %p692_p7 = pnand %p691_p5, %p685_p12 }
  0x29   : > { %695 = shalt.err (!%p692_p7)
}
  0x2a   : > { %s765_s21 = smov 128   ;;  %s766_s22 = smov 8  }
  0x2b   : > { %616 = dma.hbm_to_vmem [thread:$0]  (!%p854_p13), %s850_s25, 1024, %s858_s27, %s860_s29, %s765_s21, %s765_s21, %s766_s22  }
  0x2c   : > { %p596_p9 = scmp.ge.s32.totalorder %s762_s9, 1  ;;  %p107_p1 = scmp.lt.s32.totalorder %s762_s9, 3 }
  0x2e   : > { %p108_p3 = pnand %p596_p9, %p107_p1 }
  0x2f   : > { %s891_s23 = sand.u32 (!%p108_p3), 1, %s754_s7  }
  0x30   : > { %111 = sbr.rel (%p108_p3) target bundleno = 326 (0x146), region = 24  ;;  %s597_s24 = sshll.u32 (!%p108_p3), %s891_s23, 6 }
  0x31   : > { %s114_s26 = scalar_lea.sflag (!%p108_p3), [#allocation5], %s891_s23  ;;  %s117_s30 = scalar_lea.vmem (!%p108_p3), [#allocation4], %s597_s24 }
  0x37   : > { %741 = dma.done.wait (%p830_p6), %s114_s26, 1024  }
  0x38   : > { %743 = vsyncadd (%p830_p6), %s114_s26, 4294966272  ;;  %vm146_vm0 = vcmask 130048   ;;  %vm155_vm1 = vcmask 1047680   ;;  %v140_v0 = vld [vmem:[%s117_s30 + $0x10] sm:$0xff]  ;;  %v138_v1 = vld [vmem:[%s117_s30] sm:$0xff]  ;;  %v767_v6 = vmov 0.0  }
  0x39   : > { %v141_v2 = vld [vmem:[%s117_s30 + $0x18] sm:$0xff]  ;;  %149 = vst.msk [vmem:[#allocation2 + $0x10] sm:$0xff] %vm146_vm0, %v140_v0  ;;  %147 = vst.msk [vmem:[#allocation2] sm:$0xff] %vm146_vm0, %v138_v1  ;;  %v139_v3 = vld [vmem:[%s117_s30 + $0x8] sm:$0xff]  ;;  %s768_s17 = smov 1   ;;  %s769_s25 = smov 127  }
  0x3a   : > { %150 = vst.msk [vmem:[#allocation2 + $0x18] sm:$0xff] %vm146_vm0, %v141_v2  ;;  %v143_v4 = vld [vmem:[%s117_s30 + $0x28] sm:$0xff]  ;;  %v142_v5 = vld [vmem:[%s117_s30 + $0x20] sm:$0xff]  ;;  %148 = vst.msk [vmem:[#allocation2 + $0x8] sm:$0xff] %vm146_vm0, %v139_v3  ;;  %s770_s27 = smov 2   ;;  %s771_s28 = smov 126  }
  0x3b   : > { %158 = vst.msk [vmem:[#allocation2 + $0x10] sm:$0xff] %vm155_vm1, %v767_v6  ;;  %156 = vst.msk [vmem:[#allocation2] sm:$0xff] %vm155_vm1, %v767_v6  ;;  %v145_v7 = vld [vmem:[%s117_s30 + $0x38] sm:$0xff]  ;;  %v144_v8 = vld [vmem:[%s117_s30 + $0x30] sm:$0xff]  ;;  %vm348_vm2 = vcmask 124928   ;;  %s772_s29 = smov 3  }
  0x3c   : > { %159 = vst.msk [vmem:[#allocation2 + $0x18] sm:$0xff] %vm155_vm1, %v767_v6  ;;  %157 = vst.msk [vmem:[#allocation2 + $0x8] sm:$0xff] %vm155_vm1, %v767_v6  ;;  %s773_s2 = smov 125   ;;  %s1068_s3 = scalar_lea.vmem [#allocation7], %s597_s24 }
  0x3d   : > { %152 = vst.msk [vmem:[#allocation2 + $0x28] sm:$0xff] %vm146_vm0, %v143_v4  ;;  %151 = vst.msk [vmem:[#allocation2 + $0x20] sm:$0xff] %vm146_vm0, %v142_v5  ;;  %s608_s4 = sshll.u32 %s808_s10, 10  ;;  %s516_s5 = sshll.u32 %s1068_s3, 4  ;;  %s1094_s5 = int_to_ptr.vmem [resolvable:$true] %s516_s5 }
  0x3e   : > { %161 = vst.msk [vmem:[#allocation2 + $0x28] sm:$0xff] %vm155_vm1, %v767_v6  ;;  %160 = vst.msk [vmem:[#allocation2 + $0x20] sm:$0xff] %vm155_vm1, %v767_v6  ;;  %s1092_s14 = scalar_lea.hbm %s1143_s1, %s608_s4  ;;  %s502_s10 = scalar_lea.sflag [#allocation6], %s891_s23 }
  0x3f   : > { %154 = vst.msk [vmem:[#allocation2 + $0x38] sm:$0xff] %vm146_vm0, %v145_v7  ;;  %153 = vst.msk [vmem:[#allocation2 + $0x30] sm:$0xff] %vm146_vm0, %v144_v8  ;;  %s696_s16 = scalar_lea.vmem %s1094_s5, 1024  ;;  %p1150_p11 = scmp.ne.s32.totalorder %s1147_s18, 0 }
  0x40   : > { %163 = vst.msk [vmem:[#allocation2 + $0x38] sm:$0xff] %vm155_vm1, %v767_v6  ;;  %162 = vst.msk [vmem:[#allocation2 + $0x30] sm:$0xff] %vm155_vm1, %v767_v6  ;;  %p697_p6 = scmp.ne.s32.totalorder %s1094_s5, %s696_s16  ;;  %s774_s20 = smov [#allocation7]  }
  0x41   : > { %353 = vst.msk [vmem:[#allocation3 + $0x13] sm:$0x7] %vm348_vm2, %v767_v6  ;;  %349 = vst.msk [vmem:[#allocation3] sm:$0x7] %vm348_vm2, %v767_v6  ;;  %s700_s21 = sshll.u32 %s774_s20, 4  ;;  %s701_s21 = int_to_ptr.vmem [resolvable:$false] %s700_s21 }
  0x42   : > { %v925_v9 = vld [vmem:[#allocation2 + $0x10] sm:$0xff]  ;;  %v927_v10 = vld [vmem:[#allocation2] sm:$0xff]  ;;  %350 = vst.msk [vmem:[#allocation3 + $0x18] sm:$0x7] %vm348_vm2, %v767_v6  ;;  %351 = vst.msk [vmem:[#allocation3 + $0x30] sm:$0x7] %vm348_vm2, %v767_v6  ;;  %p698_p12 = pnand %p697_p6, %p1150_p11  ;;  %p703_p8 = scmp.lt.s32.totalorder %s1094_s5, %s701_s21 }
  0x43   : > { %184 = vrot.lane.b32.xlu1 %v925_v9, %s768_s17  ;;  %180 = vrot.lane.b32.xlu0 %v927_v10, %s768_s17  ;;  %v931_v11 = vld [vmem:[#allocation2 + $0x18] sm:$0xff]  ;;  %v933_v12 = vld [vmem:[#allocation2 + $0x8] sm:$0xff]  ;;  %352 = vst.msk [vmem:[#allocation3 + $0x48] sm:$0x7] %vm348_vm2, %v767_v6  ;;  %354 = vst.msk [vmem:[#allocation3 + $0x2b] sm:$0x7] %vm348_vm2, %v767_v6 }
  0x44   : > { %355 = vst.msk [vmem:[#allocation3 + $0x43] sm:$0x7] %vm348_vm2, %v767_v6  ;;  %356 = vst.msk [vmem:[#allocation3 + $0x5b] sm:$0x7] %vm348_vm2, %v767_v6  ;;  %v173_v58 = vmul.f32 0.46972477, %v933_v12  ;;  %p699_p13 = pneg %p698_p12 }
  0x45   : > { %v937_v13 = vld [vmem:[#allocation2 + $0x28] sm:$0xff]  ;;  %v939_v14 = vld [vmem:[#allocation2 + $0x20] sm:$0xff]  ;;  %v172_v62 = vmul.f32 0.46972477, %v927_v10  ;;  %v175_v3 = vmul.f32 0.46972477, %v931_v11 }
  0x46   : > { %v174_v4 = vmul.f32 0.46972477, %v925_v9  ;;  %s702_s22 = scalar_lea.vmem %s701_s21, 2048 }
  0x47   : > { %186 = vrot.lane.b32.xlu1 %v931_v11, %s768_s17  ;;  %182 = vrot.lane.b32.xlu0 %v933_v12, %s768_s17  ;;  %v943_v15 = vld [vmem:[#allocation2 + $0x38] sm:$0xff]  ;;  %v945_v16 = vld [vmem:[#allocation2 + $0x30] sm:$0xff]  ;;  %p704_p10 = scmp.lt.s32.totalorder %s702_s22, %s696_s16 }
  0x49   : > { %p705_p0 = por %p704_p10, %p703_p8 }
  0x4b   : > { %190 = vrot.lane.b32.xlu1 %v937_v13, %s768_s17  ;;  %188 = vrot.lane.b32.xlu0 %v939_v14, %s768_s17  ;;  %p706_p2 = pnand %p705_p0, %p699_p13 }
  0x4f   : > { %194 = vrot.lane.b32.xlu1 %v943_v15, %s768_s17  ;;  %192 = vrot.lane.b32.xlu0 %v945_v16, %s768_s17 }
  0x53   : > { %198 = vrot.lane.b32.xlu1 %v933_v12, %s769_s25  ;;  %196 = vrot.lane.b32.xlu0 %v927_v10, %s769_s25 }
  0x57   : > { %202 = vrot.lane.b32.xlu1 %v931_v11, %s769_s25  ;;  %200 = vrot.lane.b32.xlu0 %v925_v9, %s769_s25 }
  0x5b   : > { %206 = vrot.lane.b32.xlu1 %v937_v13, %s769_s25  ;;  %204 = vrot.lane.b32.xlu0 %v939_v14, %s769_s25 }
  0x5f   : > { %210 = vrot.lane.b32.xlu1 %v943_v15, %s769_s25  ;;  %208 = vrot.lane.b32.xlu0 %v945_v16, %s769_s25 }
  0x63   : > { %238 = vrot.lane.b32.xlu1 %v933_v12, %s770_s27  ;;  %236 = vrot.lane.b32.xlu0 %v927_v10, %s770_s27 }
  0x67   : > { %242 = vrot.lane.b32.xlu1 %v931_v11, %s770_s27  ;;  %240 = vrot.lane.b32.xlu0 %v925_v9, %s770_s27 }
  0x6b   : > { %246 = vrot.lane.b32.xlu1 %v937_v13, %s770_s27  ;;  %244 = vrot.lane.b32.xlu0 %v939_v14, %s770_s27 }
  0x6f   : > { %250 = vrot.lane.b32.xlu1 %v943_v15, %s770_s27  ;;  %248 = vrot.lane.b32.xlu0 %v945_v16, %s770_s27 }
  0x73   : > { %254 = vrot.lane.b32.xlu1 %v933_v12, %s771_s28  ;;  %252 = vrot.lane.b32.xlu0 %v927_v10, %s771_s28 }
  0x77   : > { %258 = vrot.lane.b32.xlu1 %v931_v11, %s771_s28  ;;  %256 = vrot.lane.b32.xlu0 %v925_v9, %s771_s28 }
  0x7b   : > { %262 = vrot.lane.b32.xlu1 %v937_v13, %s771_s28  ;;  %260 = vrot.lane.b32.xlu0 %v939_v14, %s771_s28 }
  0x7f   : > { %266 = vrot.lane.b32.xlu1 %v943_v15, %s771_s28  ;;  %264 = vrot.lane.b32.xlu0 %v945_v16, %s771_s28 }
  0x83   : > { %294 = vrot.lane.b32.xlu1 %v933_v12, %s772_s29  ;;  %292 = vrot.lane.b32.xlu0 %v927_v10, %s772_s29 }
  0x87   : > { %298 = vrot.lane.b32.xlu1 %v931_v11, %s772_s29  ;;  %296 = vrot.lane.b32.xlu0 %v925_v9, %s772_s29 }
  0x8b   : > { %302 = vrot.lane.b32.xlu1 %v937_v13, %s772_s29  ;;  %300 = vrot.lane.b32.xlu0 %v939_v14, %s772_s29 }
  0x8f   : > { %306 = vrot.lane.b32.xlu1 %v943_v15, %s772_s29  ;;  %304 = vrot.lane.b32.xlu0 %v945_v16, %s772_s29 }
  0x93   : > { %310 = vrot.lane.b32.xlu1 %v933_v12, %s773_s2  ;;  %308 = vrot.lane.b32.xlu0 %v927_v10, %s773_s2 }
  0x97   : > { %314 = vrot.lane.b32.xlu1 %v931_v11, %s773_s2  ;;  %312 = vrot.lane.b32.xlu0 %v925_v9, %s773_s2  ;;  %v1024_v11 = vmul.f32 0.46972477, %v943_v15 }
  0x9b   : > { %318 = vrot.lane.b32.xlu1 %v937_v13, %s773_s2  ;;  %316 = vrot.lane.b32.xlu0 %v939_v14, %s773_s2 }
  0x9f   : > { %322 = vrot.lane.b32.xlu1 %v943_v15, %s773_s2  ;;  %320 = vrot.lane.b32.xlu0 %v945_v16, %s773_s2 }
  0xb5   : > { %v185_v17 = vpop.permute.xlu1 %184  ;;  %v181_v18 = vpop.permute.xlu0 %180 }
  0xb9   : > { %v187_v19 = vpop.permute.xlu1 %186  ;;  %v183_v20 = vpop.permute.xlu0 %182 }
  0xbd   : > { %v191_v21 = vpop.permute.xlu1 %190  ;;  %v189_v22 = vpop.permute.xlu0 %188 }
  0xc1   : > { %v997_v23 = vpop.permute.xlu1 %194  ;;  %v193_v24 = vpop.permute.xlu0 %192 }
  0xc5   : > { %v199_v25 = vpop.permute.xlu1 %198  ;;  %v197_v26 = vpop.permute.xlu0 %196 }
  0xc6   : > { %v213_v54 = vadd.f32 %v199_v25, %v183_v20  ;;  %v212_v55 = vadd.f32 %v197_v26, %v181_v18  ;;  %v177_v18 = vmul.f32 0.46972477, %v937_v13 }
  0xc8   : > { %v221_v61 = vmul.f32 0.23486239, %v213_v54  ;;  %v220_v63 = vmul.f32 0.23486239, %v212_v55 }
  0xc9   : > { %v203_v27 = vpop.permute.xlu1 %202  ;;  %v201_v28 = vpop.permute.xlu0 %200 }
  0xca   : > { %v215_v0 = vadd.f32 %v203_v27, %v187_v19  ;;  %v214_v5 = vadd.f32 %v201_v28, %v185_v17  ;;  %v229_v8 = vadd.f32 %v221_v61, %v173_v58  ;;  %v228_v12 = vadd.f32 %v220_v63, %v172_v62 }
  0xcc   : > { %v222_v28 = vmul.f32 0.23486239, %v214_v5 }
  0xcd   : > { %v207_v29 = vpop.permute.xlu1 %206  ;;  %v205_v30 = vpop.permute.xlu0 %204 }
  0xce   : > { %v217_v10 = vadd.f32 %v207_v29, %v191_v21  ;;  %v216_v25 = vadd.f32 %v205_v30, %v189_v22 }
  0xd0   : > { %v225_v22 = vmul.f32 0.23486239, %v217_v10  ;;  %v224_v29 = vmul.f32 0.23486239, %v216_v25 }
  0xd1   : > { %v999_v31 = vpop.permute.xlu1 %210  ;;  %v209_v32 = vpop.permute.xlu0 %208 }
  0xd2   : > { %v1001_v33 = vadd.f32 %v209_v32, %v193_v24  ;;  %v223_v24 = vmul.f32 0.23486239, %v215_v0  ;;  %v176_v32 = vmul.f32 0.46972477, %v939_v14 }
  0xd4   : > { %v231_v21 = vadd.f32 %v223_v24, %v175_v3 }
  0xd5   : > { %v239_v34 = vpop.permute.xlu1 %238  ;;  %v237_v35 = vpop.permute.xlu0 %236 }
  0xd9   : > { %v243_v36 = vpop.permute.xlu1 %242  ;;  %v241_v37 = vpop.permute.xlu0 %240 }
  0xdd   : > { %v247_v38 = vpop.permute.xlu1 %246  ;;  %v245_v39 = vpop.permute.xlu0 %244 }
  0xe1   : > { %v1003_v40 = vpop.permute.xlu1 %250  ;;  %v1005_v41 = vpop.permute.xlu0 %248 }
  0xe5   : > { %v255_v42 = vpop.permute.xlu1 %254  ;;  %v253_v43 = vpop.permute.xlu0 %252 }
  0xe6   : > { %v269_v59 = vadd.f32 %v255_v42, %v239_v34  ;;  %v268_v60 = vadd.f32 %v253_v43, %v237_v35 }
  0xe8   : > { %v277_v6 = vmul.f32 0.029357798, %v269_v59  ;;  %v276_v7 = vmul.f32 0.029357798, %v268_v60  ;;  %v233_v60 = vadd.f32 %v225_v22, %v177_v18 }
  0xe9   : > { %v259_v44 = vpop.permute.xlu1 %258  ;;  %v257_v45 = vpop.permute.xlu0 %256 }
  0xea   : > { %v271_v20 = vadd.f32 %v259_v44, %v243_v36  ;;  %v270_v19 = vadd.f32 %v257_v45, %v241_v37  ;;  %v285_v34 = vadd.f32 %v277_v6, %v229_v8  ;;  %v284_v35 = vadd.f32 %v276_v7, %v228_v12 }
  0xec   : > { %v279_v43 = vmul.f32 0.029357798, %v271_v20  ;;  %v278_v30 = vmul.f32 0.029357798, %v270_v19 }
  0xed   : > { %v263_v46 = vpop.permute.xlu1 %262  ;;  %v261_v47 = vpop.permute.xlu0 %260 }
  0xee   : > { %v273_v42 = vadd.f32 %v263_v46, %v247_v38  ;;  %v272_v13 = vadd.f32 %v261_v47, %v245_v39  ;;  %v1029_v38 = vmul.f32 0.46972477, %v945_v16  ;;  %v287_v46 = vadd.f32 %v279_v43, %v231_v21 }
  0xef   : > { %v232_v16 = vadd.f32 %v224_v29, %v176_v32 }
  0xf0   : > { %v281_v39 = vmul.f32 0.029357798, %v273_v42  ;;  %v280_v47 = vmul.f32 0.029357798, %v272_v13 }
  0xf1   : > { %v267_v48 = vpop.permute.xlu1 %266  ;;  %v1007_v49 = vpop.permute.xlu0 %264 }
  0xf2   : > { %v275_v58 = vadd.f32 %v267_v48, %v1003_v40  ;;  %v1039_v48 = vmul.f32 0.23486239, %v1001_v33  ;;  %v289_v3 = vadd.f32 %v281_v39, %v233_v60  ;;  %v288_v5 = vadd.f32 %v280_v47, %v232_v16 }
  0xf4   : > { %v283_v6 = vmul.f32 0.029357798, %v275_v58 }
  0xf5   : > { %v295_v50 = vpop.permute.xlu1 %294  ;;  %v293_v51 = vpop.permute.xlu0 %292 }
  0xf9   : > { %v299_v52 = vpop.permute.xlu1 %298  ;;  %v297_v53 = vpop.permute.xlu0 %296 }
  0xfd   : > { %v1009_v56 = vpop.permute.xlu1 %302  ;;  %v1011_v57 = vpop.permute.xlu0 %300 }
 0x101   : > { %v1015_v1 = vpop.permute.xlu1 %306  ;;  %v1017_v2 = vpop.permute.xlu0 %304 }
 0x105   : > { %v311_v26 = vpop.permute.xlu1 %310  ;;  %v309_v27 = vpop.permute.xlu0 %308 }
 0x106   : > { %v325_v9 = vadd.f32 %v311_v26, %v295_v50  ;;  %v324_v17 = vadd.f32 %v309_v27, %v293_v51  ;;  %v230_v50 = vadd.f32 %v222_v28, %v174_v4  ;;  %v219_v51 = vadd.f32 %v999_v31, %v997_v23 }
 0x108   : > { %v333_v36 = vmul.f32 0.0009174312, %v325_v9  ;;  %v332_v44 = vmul.f32 0.0009174312, %v324_v17  ;;  %v227_v40 = vmul.f32 0.23486239, %v219_v51 }
 0x109   : > { %v315_v37 = vpop.permute.xlu1 %314  ;;  %v313_v45 = vpop.permute.xlu0 %312 }
 0x10a   : > { %v341_v14 = vadd.f32 %v333_v36, %v285_v34  ;;  %v340_v54 = vadd.f32 %v332_v44, %v284_v35  ;;  %v327_v15 = vadd.f32 %v315_v37, %v299_v52  ;;  %v326_v55 = vadd.f32 %v313_v45, %v297_v53 }
 0x10b   : > { %v286_v52 = vadd.f32 %v278_v30, %v230_v50  ;;  %v274_v53 = vadd.f32 %v1007_v49, %v1005_v41  ;;  %v235_v26 = vadd.f32 %v227_v40, %v1024_v11 }
 0x10c   : > { %358 = vst.msk [vmem:[#allocation3 + $0xb] sm:$0xff] %vm146_vm0, %v341_v14  ;;  %357 = vst.msk [vmem:[#allocation3 + $0x3] sm:$0xff] %vm146_vm0, %v340_v54  ;;  %v335_v59 = vmul.f32 0.0009174312, %v327_v15  ;;  %v334_v61 = vmul.f32 0.0009174312, %v326_v55 }
 0x10d   : > { %v319_v23 = vpop.permute.xlu1 %318  ;;  %v317_v31 = vpop.permute.xlu0 %316  ;;  %v1042_v7 = vmul.f32 0.029357798, %v274_v53  ;;  %v366_v8 = vmul.f32 0.46972477, %v341_v14  ;;  %v365_v12 = vmul.f32 0.46972477, %v340_v54  ;;  %v291_v13 = vadd.f32 %v283_v6, %v235_v26 }
 0x10e   : > { %v343_v62 = vadd.f32 %v335_v59, %v287_v46  ;;  %v329_v63 = vadd.f32 %v319_v23, %v1009_v56  ;;  %v328_v0 = vadd.f32 %v317_v31, %v1011_v57  ;;  %v342_v4 = vadd.f32 %v334_v61, %v286_v52 }
 0x110   : > { %360 = vst.msk [vmem:[#allocation3 + $0x23] sm:$0xff] %vm146_vm0, %v343_v62  ;;  %v337_v41 = vmul.f32 0.0009174312, %v329_v63  ;;  %v336_v49 = vmul.f32 0.0009174312, %v328_v0  ;;  %359 = vst.msk [vmem:[#allocation3 + $0x1b] sm:$0xff] %vm146_vm0, %v342_v4 }
 0x111   : > { %v323_v56 = vpop.permute.xlu1 %322  ;;  %v1045_v57 = vmul.f32 0.46972477, %v343_v62  ;;  %v1048_v19 = vmul.f32 0.46972477, %v342_v4  ;;  %v321_v15 = vpop.permute.xlu0 %320 }
 0x112   : > { %v345_v18 = vadd.f32 %v337_v41, %v289_v3  ;;  %v344_v33 = vadd.f32 %v336_v49, %v288_v5  ;;  %v331_v20 = vadd.f32 %v323_v56, %v1015_v1  ;;  %v330_v0 = vadd.f32 %v321_v15, %v1017_v2 }
 0x113   : > { %v374_v24 = vld [vmem:[#allocation3 + $0xc] sm:$0xff]  ;;  %v373_v27 = vld [vmem:[#allocation3 + $0x4] sm:$0xff] }
 0x114   : > { %v414_v10 = vld [vmem:[#allocation3 + $0xd] sm:$0xff]  ;;  %v381_v32 = vld [vmem:[#allocation3 + $0x2] sm:$0xff]  ;;  %362 = vst.msk [vmem:[#allocation3 + $0x3b] sm:$0xff] %vm146_vm0, %v345_v18  ;;  %v1052_v17 = vmul.f32 0.46972477, %v345_v18  ;;  %361 = vst.msk [vmem:[#allocation3 + $0x33] sm:$0xff] %vm146_vm0, %v344_v33 }
 0x115   : > { %v454_v25 = vld [vmem:[#allocation3 + $0xe] sm:$0xff]  ;;  %v389_v28 = vadd.f32 %v381_v32, %v373_v27  ;;  %v413_v35 = vld [vmem:[#allocation3 + $0x5] sm:$0xff]  ;;  %v1055_v43 = vmul.f32 0.46972477, %v344_v33  ;;  %v339_v29 = vmul.f32 0.0009174312, %v331_v20 }
 0x116   : > { %v382_v9 = vld [vmem:[#allocation3 + $0xa] sm:$0xff]  ;;  %v421_v1 = vld [vmem:[#allocation3 + $0x1] sm:$0xff] }
 0x117   : > { %v390_v34 = vadd.f32 %v382_v9, %v374_v24  ;;  %v422_v42 = vld [vmem:[#allocation3 + $0x9] sm:$0xff]  ;;  %v429_v36 = vadd.f32 %v421_v1, %v413_v35  ;;  %v461_v21 = vld [vmem:[#allocation3] sm:$0xff]  ;;  %v397_v30 = vmul.f32 0.23486239, %v389_v28  ;;  %v1057_v46 = vadd.f32 %v339_v29, %v291_v13  ;;  %v463_v41 = vld [vmem:[#allocation3 + $0x18] sm:$0xff] }
 0x118   : > { %v430_v44 = vadd.f32 %v422_v42, %v414_v10  ;;  %v453_v11 = vld [vmem:[#allocation3 + $0x6] sm:$0xff]  ;;  %v375_v39 = vld [vmem:[#allocation3 + $0x1c] sm:$0xff]  ;;  %v234_v42 = vadd.f32 %v1039_v48, %v1029_v38 }
 0x119   : > { %v462_v22 = vld [vmem:[#allocation3 + $0x8] sm:$0xff]  ;;  %v398_v37 = vmul.f32 0.23486239, %v390_v34  ;;  %v469_v45 = vadd.f32 %v461_v21, %v453_v11  ;;  %v437_v55 = vmul.f32 0.029357798, %v429_v36  ;;  %v405_v47 = vadd.f32 %v397_v30, %v365_v12  ;;  %v383_v52 = vld [vmem:[#allocation3 + $0x1a] sm:$0xff] }
 0x11a   : > { %v470_v14 = vadd.f32 %v462_v22, %v454_v25  ;;  %v376_v54 = vld [vmem:[#allocation3 + $0x24] sm:$0xff]  ;;  %v438_v50 = vmul.f32 0.029357798, %v430_v44  ;;  %v391_v23 = vadd.f32 %v383_v52, %v375_v39  ;;  %v423_v62 = vld [vmem:[#allocation3 + $0x19] sm:$0xff]  ;;  %364 = vst.msk [vmem:[#allocation3 + $0x53] sm:$0xff] %vm146_vm0, %v1057_v46 }
 0x11b   : > { %v416_v51 = vld [vmem:[#allocation3 + $0x25] sm:$0xff]  ;;  %v406_v58 = vadd.f32 %v398_v37, %v366_v8  ;;  %v477_v59 = vmul.f32 0.0009174312, %v469_v45  ;;  %v415_v16 = vld [vmem:[#allocation3 + $0x1d] sm:$0xff]  ;;  %v445_v40 = vadd.f32 %v437_v55, %v405_v47  ;;  %v377_v2 = vld [vmem:[#allocation3 + $0x34] sm:$0xff]  ;;  %v290_v55 = vadd.f32 %v1042_v7, %v234_v42 }
 0x11c   : > { %v456_v60 = vld [vmem:[#allocation3 + $0x26] sm:$0xff]  ;;  %v478_v61 = vmul.f32 0.0009174312, %v470_v14  ;;  %v431_v4 = vadd.f32 %v423_v62, %v415_v16  ;;  %v455_v6 = vld [vmem:[#allocation3 + $0x1e] sm:$0xff]  ;;  %v399_v8 = vmul.f32 0.23486239, %v391_v23 }
 0x11d   : > { %v384_v53 = vld [vmem:[#allocation3 + $0x22] sm:$0xff]  ;;  %v446_v3 = vadd.f32 %v438_v50, %v406_v58  ;;  %v471_v56 = vadd.f32 %v463_v41, %v455_v6  ;;  %v485_v24 = vadd.f32 %v477_v59, %v445_v40  ;;  %v385_v35 = vld [vmem:[#allocation3 + $0x32] sm:$0xff]  ;;  %v386_v1 = vld [vmem:[#allocation3 + $0x3a] sm:$0xff]  ;;  %v338_v11 = vmul.f32 0.0009174312, %v330_v0 }
 0x11e   : > { %v392_v31 = vadd.f32 %v384_v53, %v376_v54  ;;  %v424_v63 = vld [vmem:[#allocation3 + $0x21] sm:$0xff]  ;;  %v439_v25 = vmul.f32 0.029357798, %v431_v4  ;;  %v407_v32 = vadd.f32 %v399_v8, %v1048_v19  ;;  %v393_v13 = vadd.f32 %v385_v35, %v377_v2  ;;  %v417_v36 = vld [vmem:[#allocation3 + $0x35] sm:$0xff] }
 0x11f   : > { %v432_v5 = vadd.f32 %v424_v63, %v416_v51  ;;  %v464_v49 = vld [vmem:[#allocation3 + $0x20] sm:$0xff]  ;;  %v486_v10 = vadd.f32 %v478_v61, %v446_v3  ;;  %v479_v28 = vmul.f32 0.0009174312, %v471_v56  ;;  %493 = vst.msk [vmem:[%s1068_s3] sm:$0xff] %vm146_vm0, %v485_v24  ;;  %v457_v48 = vld [vmem:[#allocation3 + $0x36] sm:$0xff] }
 0x120   : > { %v400_v12 = vmul.f32 0.23486239, %v392_v31  ;;  %v472_v18 = vadd.f32 %v464_v49, %v456_v60  ;;  %v378_v33 = vld [vmem:[#allocation3 + $0x3c] sm:$0xff]  ;;  %v447_v21 = vadd.f32 %v439_v25, %v407_v32  ;;  %v465_v30 = vld [vmem:[#allocation3 + $0x30] sm:$0xff]  ;;  %v401_v45 = vmul.f32 0.23486239, %v393_v13 }
 0x121   : > { %v418_v20 = vld [vmem:[#allocation3 + $0x3d] sm:$0xff]  ;;  %v440_v26 = vmul.f32 0.029357798, %v432_v5  ;;  %494 = vst.msk [vmem:[%s1068_s3 + $0x8] sm:$0xff] %vm146_vm0, %v486_v10  ;;  %v394_v19 = vadd.f32 %v386_v1, %v378_v33  ;;  %v473_v54 = vadd.f32 %v465_v30, %v457_v48  ;;  %v346_v60 = vadd.f32 %v338_v11, %v290_v55 }
 0x122   : > { %v458_v27 = vld [vmem:[#allocation3 + $0x3e] sm:$0xff]  ;;  %v408_v9 = vadd.f32 %v400_v12, %v1045_v57  ;;  %v480_v34 = vmul.f32 0.0009174312, %v472_v18  ;;  %v425_v57 = vld [vmem:[#allocation3 + $0x31] sm:$0xff]  ;;  %v487_v50 = vadd.f32 %v479_v28, %v447_v21  ;;  %v409_v39 = vadd.f32 %v401_v45, %v1055_v43 }
 0x123   : > { %v426_v44 = vld [vmem:[#allocation3 + $0x39] sm:$0xff]  ;;  %v433_v29 = vadd.f32 %v425_v57, %v417_v36  ;;  %v402_v14 = vmul.f32 0.23486239, %v394_v19  ;;  %v481_v61 = vmul.f32 0.0009174312, %v473_v54  ;;  %363 = vst.msk [vmem:[#allocation3 + $0x4b] sm:$0xff] %vm146_vm0, %v346_v60 }
 0x124   : > { %v448_v22 = vadd.f32 %v440_v26, %v408_v9  ;;  %v434_v38 = vadd.f32 %v426_v44, %v418_v20  ;;  %v466_v37 = vld [vmem:[#allocation3 + $0x38] sm:$0xff]  ;;  %495 = vst.msk [vmem:[%s1068_s3 + $0x10] sm:$0xff] %vm146_vm0, %v487_v50  ;;  %v372_v40 = vmul.f32 0.46972477, %v1057_v46  ;;  %v371_v49 = vmul.f32 0.46972477, %v346_v60 }
 0x125   : > { %v474_v15 = vadd.f32 %v466_v37, %v458_v27  ;;  %v410_v47 = vadd.f32 %v402_v14, %v1052_v17  ;;  %v441_v58 = vmul.f32 0.029357798, %v433_v29  ;;  %v380_v17 = vld [vmem:[#allocation3 + $0x54] sm:$0xff] }
 0x126   : > { %v488_v51 = vadd.f32 %v480_v34, %v448_v22  ;;  %v442_v59 = vmul.f32 0.029357798, %v434_v38  ;;  %v420_v43 = vld [vmem:[#allocation3 + $0x55] sm:$0xff] }
 0x127   : > { %v449_v52 = vadd.f32 %v441_v58, %v409_v39  ;;  %v482_v23 = vmul.f32 0.0009174312, %v474_v15  ;;  %v460_v16 = vld [vmem:[#allocation3 + $0x56] sm:$0xff] }
 0x128   : > { %496 = vst.msk [vmem:[%s1068_s3 + $0x18] sm:$0xff] %vm146_vm0, %v488_v51  ;;  %v450_v53 = vadd.f32 %v442_v59, %v410_v47 }
 0x129   : > { %v489_v7 = vadd.f32 %v481_v61, %v449_v52 }
 0x12a   : > { %v490_v31 = vadd.f32 %v482_v23, %v450_v53  ;;  %v379_v62 = vld [vmem:[#allocation3 + $0x4c] sm:$0xff] }
 0x12b   : > { %497 = vst.msk [vmem:[%s1068_s3 + $0x20] sm:$0xff] %vm146_vm0, %v489_v7  ;;  %v387_v63 = vld [vmem:[#allocation3 + $0x4a] sm:$0xff]  ;;  %v388_v0 = vld [vmem:[#allocation3 + $0x52] sm:$0xff] }
 0x12c   : > { %498 = vst.msk [vmem:[%s1068_s3 + $0x28] sm:$0xff] %vm146_vm0, %v490_v31  ;;  %v395_v3 = vadd.f32 %v387_v63, %v379_v62  ;;  %v396_v4 = vadd.f32 %v388_v0, %v380_v17  ;;  %v419_v5 = vld [vmem:[#allocation3 + $0x4d] sm:$0xff] }
 0x12d   : > { %v427_v6 = vld [vmem:[#allocation3 + $0x49] sm:$0xff]  ;;  %v428_v41 = vld [vmem:[#allocation3 + $0x51] sm:$0xff] }
 0x12e   : > { %v435_v8 = vadd.f32 %v427_v6, %v419_v5  ;;  %v436_v12 = vadd.f32 %v428_v41, %v420_v43  ;;  %v459_v56 = vld [vmem:[#allocation3 + $0x4e] sm:$0xff]  ;;  %v403_v20 = vmul.f32 0.23486239, %v395_v3  ;;  %v404_v24 = vmul.f32 0.23486239, %v396_v4 }
 0x12f   : > { %v467_v18 = vld [vmem:[#allocation3 + $0x48] sm:$0xff]  ;;  %v468_v33 = vld [vmem:[#allocation3 + $0x50] sm:$0xff] }
 0x130   : > { %v475_v10 = vadd.f32 %v467_v18, %v459_v56  ;;  %v476_v25 = vadd.f32 %v468_v33, %v460_v16  ;;  %v411_v46 = vadd.f32 %v403_v20, %v371_v49  ;;  %v412_v26 = vadd.f32 %v404_v24, %v372_v40 }
 0x131   : > { %v443_v27 = vmul.f32 0.029357798, %v435_v8  ;;  %v444_v2 = vmul.f32 0.029357798, %v436_v12 }
 0x132   : > { %v483_v28 = vmul.f32 0.0009174312, %v475_v10  ;;  %v484_v34 = vmul.f32 0.0009174312, %v476_v25 }
 0x133   : > { %v451_v32 = vadd.f32 %v443_v27, %v411_v46  ;;  %v452_v9 = vadd.f32 %v444_v2, %v412_v26 }
 0x135   : > { %v491_v35 = vadd.f32 %v483_v28, %v451_v32  ;;  %v492_v1 = vadd.f32 %v484_v34, %v452_v9 }
 0x137   : > { %499 = vst.msk [vmem:[%s1068_s3 + $0x30] sm:$0xff] %vm146_vm0, %v491_v35  ;;  %500 = vst.msk [vmem:[%s1068_s3 + $0x38] sm:$0xff] %vm146_vm0, %v492_v1 }
 0x138   : > { %709 = shalt.err (!%p706_p2)
}
 0x139   : > { %s710_s24 = scalar_lea.hbm %s1092_s14, 1024  ;;  %s714_s17 = scalar_lea.hbm %s1143_s1, 2048 }
 0x13a   : > { %p711_p4 = scmp.ne.s32.totalorder %s1092_s14, %s710_s24  ;;  %p715_p9 = scmp.lt.u32.totalorder %s1092_s14, %s1143_s1 }
 0x13b   : > { %p716_p1 = scmp.lt.u32.totalorder %s714_s17, %s710_s24  ;;  %p718_p6 = scmp.lt.u32.totalorder %s710_s24, %s1092_s14 }
 0x13c   : > { %p712_p5 = pnand %p711_p4, %p1150_p11 }
 0x13d   : > { %p717_p3 = por %p716_p1, %p715_p9 }
 0x13e   : > { %p713_p7 = pneg %p712_p5 }
 0x13f   : > { %p719_p12 = por %p718_p6, %p717_p3 }
 0x141   : > { %p720_p13 = pnand %p719_p12, %p713_p7 }
 0x143   : > { %723 = shalt.err (!%p720_p13)
}
 0x144   : > { %s775_s28 = smov 128   ;;  %s776_s29 = smov 8  }
 0x145   : > { %611 = dma.vmem_to_hbm [thread:$0]  (%p1150_p11), %s1094_s5, 1024, %s1092_s14, %s502_s10, %s775_s28, %s775_s28, %s776_s29  }
 0x146 PF: > { %s531_s2 = sand.u32 1, %s750_s6   ;;  %p1151_p8 = scmp.ne.s32.totalorder %s1148_s19, 0 }
 0x147   : > { %p1152_p10 = scmp.ge.s32.totalorder %s762_s9, 2  ;;  %s532_s3 = scalar_lea.sflag [#allocation6], %s531_s2 }
 0x149   : > { %p618_p0 = pnand %p1152_p10, %p1151_p8 }
 0x14b   : > { %745 = dma.done.wait (!%p618_p0), %s532_s3, 1024  }
 0x14c   : > { %747 = vsyncadd (!%p618_p0), %s532_s3, 4294966272  ;;  %p14_p2 = scmp.ge.s32.totalorder %s812_s12, 4   ;;  %s1153_s6 = smov %s754_s7 }
 0x14d   : > { %s1154_s7 = smov %s758_s8  ;;  %s1155_s8 = smov %s824_s15 }
 0x14e   : > { %s1156_s9 = smov %s812_s12  ;;  %16 = sbr.rel (!%p14_p2) target bundleno = 5 (0x5), region = 69 }
 0x155   :  { %537 = vsyncpa [#allocation5], 1 }
 0x156   :  { %539 = vsyncpa [#allocation5 + $0x1], 1 }
 0x157   :  { %540 = vsyncpa [#allocation6], 1 }
 0x158   :  { %542 = vsyncpa [#allocation6 + $0x1], 1 }

</bundles_post_ra>
